<compile_context>
chip_gen: v6e
topology: v6e:2x2x1
jax: 0.10.0
libtpu: 0.0.40
codegen_flags: <defaults>
</compile_context>

<pallas_src>
import functools
import math

import jax
import jax.numpy as jnp
from jax.experimental import pallas as pl
from jax.experimental.pallas import tpu as pltpu


def conv3x3_ps_kernel(x_ref, w_ref, o_ref, *, th, wd):
    """One (batch b, row-tile t) step of the 3x3 'same' conv.

    x_ref: (1, Cin, H+2, W+2)  zero-padded image (resident across row tiles)
    w_ref: (Cout, 9*Cin)       conv weights, K ordered as (kh, kw, cin)
    o_ref: (1, Cout, Th*W)     conv output tile, NCHW flattened over (H, W)
    """
    cin = x_ref.shape[1]
    # First output row of this tile (multiple of the row-tile size).
    h0 = pl.multiple_of(pl.program_id(1) * th, th)
    # Row band incl. the 2-row conv halo, sliced out of the resident image.
    band = x_ref[0, :, pl.ds(h0, th + 2), :]            # (Cin, Th+2, W+2)
    # The 9 shifted 3x3 taps, stacked on the contraction axis.
    taps = jnp.concatenate(
        [band[:, kh:kh + th, kw:kw + wd].reshape(cin, th * wd)
         for kh in range(3) for kw in range(3)],
        axis=0,
    )                                                    # (9*Cin, Th*W)
    # Single fused GEMM: spatial tile (multiple of 128) on the lane axis.
    acc = jnp.dot(w_ref[...], taps, preferred_element_type=jnp.float32)
    o_ref[0] = acc.astype(o_ref.dtype)                   # dense (Cout, Th*W) store


def _pick_row_tile(h, w):
    """Rows per tile: Th*W a multiple of 128 (lane-dense stores), Th | H,
    >= 2 tiles per image when possible, tile <= ~2048 lanes (VMEM headroom)."""
    step = 128 // math.gcd(w, 128)
    cands = [t for t in range(step, h + 1, step) if h % t == 0]
    if not cands:
        return h                       # single tile; block == full dims is legal
    multi = [t for t in cands if h // t >= 2] or cands
    fitting = [t for t in multi if t * w <= 2048]
    return max(fitting) if fitting else min(multi)


def pixel_shuffle_nchw(x_nchw, r):
    """torch.nn.PixelShuffle(r) semantics on NCHW."""
    b, c, h, w = x_nchw.shape
    cout = c // (r * r)
    y = x_nchw.reshape(b, cout, r, r, h, w)
    y = y.transpose(0, 1, 4, 2, 5, 3)
    return y.reshape(b, cout, h * r, w * r)


def conv3x3_pixelshuffle_upsample(x_nchw, w_oihw, *, compute_dtype=None):
    """Full Upsample.forward: conv3x3 (no bias) -> PixelShuffle(2).  NCHW in/out."""
    b, cin, h, w = x_nchw.shape
    cout = w_oihw.shape[0]
    th = _pick_row_tile(h, w)
    nt = h // th
    t_lanes = th * w

    dt = compute_dtype if compute_dtype is not None else x_nchw.dtype
    # Zero padding == Conv2d(padding=1).  This is the only input pre-pass;
    # the 9 taps are never materialized in HBM.
    x_pad = jnp.pad(x_nchw, ((0, 0), (0, 0), (1, 1), (1, 1))).astype(dt)
    # OIHW -> (Cout, kh, kw, Cin) -> (Cout, 9*Cin), matching the kernel's tap order.
    w_flat = jnp.transpose(w_oihw, (0, 2, 3, 1)).reshape(cout, 9 * cin).astype(dt)

    kernel = functools.partial(conv3x3_ps_kernel, th=th, wd=w)
    conv_flat = pl.pallas_call(
        kernel,
        out_shape=jax.ShapeDtypeStruct((b, cout, h * w), x_nchw.dtype),
        grid_spec=pltpu.PrefetchScalarGridSpec(
            num_scalar_prefetch=0,
            grid=(b, nt),
            in_specs=[
                # Padded image: index_map ignores the tile axis -> stays
                # resident in VMEM across row tiles (no re-DMA).
                pl.BlockSpec((1, cin, h + 2, w + 2), lambda bi, ti: (bi, 0, 0, 0)),
                # Weights: tiny, resident across the whole grid.
                pl.BlockSpec((cout, 9 * cin), lambda bi, ti: (0, 0)),
            ],
            out_specs=pl.BlockSpec((1, cout, t_lanes), lambda bi, ti: (bi, 0, ti)),
        ),
        compiler_params=pltpu.CompilerParams(
            dimension_semantics=("parallel", "parallel"),
        ),
    )(x_pad, w_flat)

    # Output is already the NCHW conv result (flattened over H*W): reshape is
    # free metadata, then a single XLA pass does the PixelShuffle.
    conv_nchw = conv_flat.reshape(b, cout, h, w)
    return pixel_shuffle_nchw(conv_nchw, 2)


def upsample_reference(x_nchw, w_oihw):
    """Pure-JAX reference (matches torch.nn.Conv2d + PixelShuffle)."""
    conv = jax.lax.conv_general_dilated(
        x_nchw, w_oihw,
        window_strides=(1, 1),
        padding=((1, 1), (1, 1)),
        dimension_numbers=("NCHW", "OIHW", "NCHW"),
    )
    return pixel_shuffle_nchw(conv, 2)


if __name__ == "__main__":
    n_feat = 4
    B, H, W = 2, 16, 16

    key = jax.random.PRNGKey(0)
    kx, kw = jax.random.split(key)
    x = jax.random.normal(kx, (B, n_feat, H, W), dtype=jnp.float32)
    # Conv2d weight (out_channels=2*n_feat, in_channels=n_feat, 3, 3), no bias.
    w = (jax.random.normal(kw, (2 * n_feat, n_feat, 3, 3), dtype=jnp.float32)
         * (1.0 / (3.0 * jnp.sqrt(float(n_feat)))))

    # f32 here so the exact check vs. the XLA reference holds; on v6e/v7x pass
    # compute_dtype=jnp.bfloat16 for the bandwidth-bound production path.
    out = conv3x3_pixelshuffle_upsample(x, w)
    out = jax.block_until_ready(out)

    ref = upsample_reference(x, w)
    assert out.shape == (B, n_feat // 2, 2 * H, 2 * W), out.shape
    assert jnp.allclose(out, ref, atol=1e-4, rtol=1e-4), "mismatch vs reference"

    print("KERNEL_OK")
</pallas_src>

<mosaic_0001>
module attributes {stable_mosaic.version = 11 : i64} {
  func.func @conv3x3_ps_kernel(%arg0: i32, %arg1: i32, %arg2: memref<1x4x18x18xf32, #tpu.memory_space<vmem>>, %arg3: memref<8x36xf32, #tpu.memory_space<vmem>>, %arg4: memref<1x8x128xf32, #tpu.memory_space<vmem>>) attributes {dimension_semantics = [#tpu.dimension_semantics<parallel>, #tpu.dimension_semantics<parallel>], iteration_bounds = array<i64: 2, 2>, scalar_prefetch = 0 : i64, scratch_operands = 0 : i64, tpu.core_type = #tpu.core_type<tc>, window_params = [{transform_indices = @transform_0, window_bounds = array<i64: 1, 4, 18, 18>}, {pipeline_mode = #tpu.pipeline_mode<synchronous>, transform_indices = @transform_1, window_bounds = array<i64: 8, 36>}, {transform_indices = @transform_2, window_bounds = array<i64: 1, 8, 128>}]} {
    %c8_i32 = arith.constant 8 : i32
    %0 = arith.muli %arg1, %c8_i32 : i32
    %1 = tpu.assume_multiple %0, 8 : i32
    %c0 = arith.constant 0 : index
    %c0_0 = arith.constant 0 : index
    %2 = arith.index_cast %1 : i32 to index
    %c0_1 = arith.constant 0 : index
    %3 = vector.load %arg2[%c0, %c0_0, %2, %c0_1] : memref<1x4x18x18xf32, #tpu.memory_space<vmem>>, vector<1x4x10x18xf32>
    %4 = vector.shape_cast %3 : vector<1x4x10x18xf32> to vector<4x10x18xf32>
    %5 = vector.extract_strided_slice %4 {offsets = [0, 0, 0], sizes = [4, 8, 16], strides = [1, 1, 1]} : vector<4x10x18xf32> to vector<4x8x16xf32>
    %6 = vector.shape_cast %5 : vector<4x8x16xf32> to vector<4x128xf32>
    %7 = vector.extract_strided_slice %4 {offsets = [0, 0, 1], sizes = [4, 8, 16], strides = [1, 1, 1]} : vector<4x10x18xf32> to vector<4x8x16xf32>
    %8 = vector.shape_cast %7 : vector<4x8x16xf32> to vector<4x128xf32>
    %9 = vector.extract_strided_slice %4 {offsets = [0, 0, 2], sizes = [4, 8, 16], strides = [1, 1, 1]} : vector<4x10x18xf32> to vector<4x8x16xf32>
    %10 = vector.shape_cast %9 : vector<4x8x16xf32> to vector<4x128xf32>
    %11 = vector.extract_strided_slice %4 {offsets = [0, 1, 0], sizes = [4, 8, 16], strides = [1, 1, 1]} : vector<4x10x18xf32> to vector<4x8x16xf32>
    %12 = vector.shape_cast %11 : vector<4x8x16xf32> to vector<4x128xf32>
    %13 = vector.extract_strided_slice %4 {offsets = [0, 1, 1], sizes = [4, 8, 16], strides = [1, 1, 1]} : vector<4x10x18xf32> to vector<4x8x16xf32>
    %14 = vector.shape_cast %13 : vector<4x8x16xf32> to vector<4x128xf32>
    %15 = vector.extract_strided_slice %4 {offsets = [0, 1, 2], sizes = [4, 8, 16], strides = [1, 1, 1]} : vector<4x10x18xf32> to vector<4x8x16xf32>
    %16 = vector.shape_cast %15 : vector<4x8x16xf32> to vector<4x128xf32>
    %17 = vector.extract_strided_slice %4 {offsets = [0, 2, 0], sizes = [4, 8, 16], strides = [1, 1, 1]} : vector<4x10x18xf32> to vector<4x8x16xf32>
    %18 = vector.shape_cast %17 : vector<4x8x16xf32> to vector<4x128xf32>
    %19 = vector.extract_strided_slice %4 {offsets = [0, 2, 1], sizes = [4, 8, 16], strides = [1, 1, 1]} : vector<4x10x18xf32> to vector<4x8x16xf32>
    %20 = vector.shape_cast %19 : vector<4x8x16xf32> to vector<4x128xf32>
    %21 = vector.extract_strided_slice %4 {offsets = [0, 2, 2], sizes = [4, 8, 16], strides = [1, 1, 1]} : vector<4x10x18xf32> to vector<4x8x16xf32>
    %22 = vector.shape_cast %21 : vector<4x8x16xf32> to vector<4x128xf32>
    %23 = tpu.concatenate %6, %8, %10, %12, %14, %16, %18, %20, %22 in 0 : vector<4x128xf32>, vector<4x128xf32>, vector<4x128xf32>, vector<4x128xf32>, vector<4x128xf32>, vector<4x128xf32>, vector<4x128xf32>, vector<4x128xf32>, vector<4x128xf32> -> vector<36x128xf32>
    %c0_2 = arith.constant 0 : index
    %c0_3 = arith.constant 0 : index
    %24 = vector.load %arg3[%c0_2, %c0_3] : memref<8x36xf32, #tpu.memory_space<vmem>>, vector<8x36xf32>
    %cst = arith.constant dense<0.000000e+00> : vector<8x128xf32>
    %25 = tpu.matmul %24, %23, %cst {dimension_numbers = #tpu.dot_dimension_numbers<[1], [0], [0], [1], [0, 0, 1, 1], [], []>} : vector<8x36xf32>, vector<36x128xf32>, vector<8x128xf32> -> vector<8x128xf32>
    %c0_4 = arith.constant 0 : index
    %c0_5 = arith.constant 0 : index
    %c0_6 = arith.constant 0 : index
    %26 = vector.load %arg4[%c0_4, %c0_5, %c0_6] : memref<1x8x128xf32, #tpu.memory_space<vmem>>, vector<1x8x128xf32>
    %27 = vector.shape_cast %26 : vector<1x8x128xf32> to vector<8x128xf32>
    %28 = vector.shape_cast %25 : vector<8x128xf32> to vector<1x8x128xf32>
    tpu.vector_store %arg4[%c0_4, %c0_5, %c0_6], %28 {strides = array<i32>} : memref<1x8x128xf32, #tpu.memory_space<vmem>>, vector<1x8x128xf32>,
    return
  }
  func.func @transform_0(%arg0: i32, %arg1: i32) -> (i32, i32, i32, i32) {
    %c0_i32 = arith.constant 0 : i32
    %c0_i32_0 = arith.constant 0 : i32
    %c0_i32_1 = arith.constant 0 : i32
    %c0_i32_2 = arith.constant 0 : i32
    return %arg0, %c0_i32, %c0_i32_0, %c0_i32_1 : i32, i32, i32, i32
  }
  func.func @transform_1(%arg0: i32, %arg1: i32) -> (i32, i32) {
    %c0_i32 = arith.constant 0 : i32
    %c0_i32_0 = arith.constant 0 : i32
    %c0_i32_1 = arith.constant 0 : i32
    return %c0_i32, %c0_i32_0 : i32, i32
  }
  func.func @transform_2(%arg0: i32, %arg1: i32) -> (i32, i32, i32) {
    %c0_i32 = arith.constant 0 : i32
    %c0_i32_0 = arith.constant 0 : i32
    return %arg0, %c0_i32, %arg1 : i32, i32, i32
  }
}

</mosaic_0001>

<bundles_post_ra>
// kernel: tpu_custom_call.1
= control target key start
LH: loop header
LB: loop body
LE: loop exit
PB: predicated region body
PF: predicated region fallthrough
CT: control target
= control target key end

     0   :  { %7 = vsyncpa [#allocation3], 0  ;;  %s2307_s0 = inlined_call_operand.vmem [shape: f32[2,4,18,18], index: 0, kind: input, shape index: {}]   ;;  %s2308_s1 = inlined_call_operand.vmem [shape: f32[8,36], index: 1, kind: input, shape index: {}]   ;;  %s2309_s2 = inlined_call_operand.hbm [shape: f32[2,8,256], index: 2, kind: output, shape index: {}]  }
   0x1   :  { %9 = vsyncpa [#allocation3 + $0x1], 0  ;;  %s1646_s9 = smov 0   ;;  %s1648_s10 = smov 0  }
   0x2   :  { %s1650_s11 = smov 0   ;;  %s1652_s12 = smov 0  }
   0x3   :  { %s1654_s13 = smov 0   ;;  %s1656_s14 = smov 0  }
   0x4   :  { %s1658_s15 = smov 0   ;;  %s1660_s16 = smov 0  }
   0x5 LB: > { %s1400_s17 = sadd.s32 4294967295, %s1615_s16   ;;  %s1401_s18 = sadd.s32 4294967294, %s1615_s16   ;;  %s1615_s16 = sphi %s1660_s16, %s15_s16   ;;  %s1611_s15 = sphi %s1658_s15, %s2318_s15   ;;  %s1607_s14 = sphi %s1656_s14, %s2317_s14   ;;  %s1603_s13 = sphi %s1654_s13, %s2316_s13   ;;  %s1599_s12 = sphi %s1652_s12, %s2315_s12   ;;  %s1595_s11 = sphi %s1650_s11, %s2314_s11   ;;  %s1591_s10 = sphi %s1648_s10, %s2313_s10   ;;  %s1587_s9 = sphi %s1646_s9, %s2312_s9  }
   0x6   : > { %s24_s19 = sadd.s32 1, %s1607_s14  ;;  %s27_s20 = sadd.s32 1, %s1611_s15 }
   0x7   : > { %p25_p0 = scmp.ge.s32.totalorder %s24_s19, 2  ;;  %p93_p1 = scmp.ne.s32.totalorder %s1595_s11, %s1591_s10 }
   0x8   : > { %p94_p2 = scmp.eq.s32.totalorder %s1400_s17, 3  ;;  %p99_p5 = scmp.ne.s32.totalorder %s1591_s10, %s1587_s9 }
   0x9   : > { %s2320_s19 = smov (%p25_p0, %s24_s19), 0  ;;  %s2322_s20 = smov (!%p25_p0, %s27_s20), %s1611_s15 }
   0xa   : > { %s79_s21 = ssub.s32 %s1607_s14, %s2320_s19  ;;  %p1697_p3 = por %p94_p2, %p93_p1 }
   0xb   : > { %p29_p4 = scmp.ge.s32.totalorder %s2322_s20, 2  ;;  %p100_p6 = scmp.eq.s32.totalorder %s1401_s18, 3 }
   0xc   : > { %p1404_p7 = scmp.ge.s32.totalorder %s1615_s16, 1  ;;  %p129_p9 = scmp.lt.s32.totalorder %s1615_s16, 5 }
   0xd   : > { %s2324_s20 = smov (%p29_p4, %s2322_s20), 0  ;;  %p1706_p8 = por %p100_p6, %p99_p5 }
   0xe   : > { %s78_s24 = ssub.s32 %s1611_s15, %s2324_s20  ;;  %s83_s25 = sadd.s32 1, %s1595_s11 }
   0xf   : > { %s80_s26 = sor.u32 %s79_s21, %s78_s24  ;;  %p130_p10 = pnand %p1404_p7, %p129_p9 }
  0x10   : > { %p81_p11 = scmp.eq.s32.totalorder %s80_s26, 0  ;;  %p151_p12 = scmp.lt.s32.totalorder (!%p130_p10), %s1603_s13, 1 }
  0x11   : > { %133 = sbr.rel (%p130_p10) target bundleno = 617 (0x269), region = 28  ;;  %s1407_s30 = sshll.u32 (!%p130_p10), %s1599_s12, 3 }
  0x12   : > { %s1715_s27 = scalar_select %p81_p11, %s1595_s11, %s83_s25  }
  0x13   : > { %s1618_s7 = smov (!%p130_p10), 127   ;;  %s1619_s8 = smov (!%p130_p10), 126  }
  0x14   : > { %s1622_s17 = smov (!%p130_p10), 16   ;;  %s1623_s18 = smov (!%p130_p10), 32  }
  0x15   : > { %s1624_s21 = smov (!%p130_p10), 48   ;;  %s1625_s24 = smov (!%p130_p10), 64  }
  0x16   : > { %s152_s28 = scalar_select %p151_p12, %s1603_s13, 1  ;;  %v1617_v0 = vmov 0.0   ;;  %vm864_vm0 = vcmask 1045504   ;;  %vm514_vm1 = vcmask 1046528   ;;  %v1620_v33 = vmov 1983009808  }
  0x17   : > { %1421 = vmatprep.subr.mxu0 %v1617_v0  ;;  %v169_v34 = vunpack.c.l.s4 %v1620_v33  ;;  %v171_v35 = vlaneseq  ;;  %v1621_v43 = vmov 1934713408   ;;  %s1626_s25 = smov 80   ;;  %s1627_s26 = smov 96   ;;  %vm262_vm2 = vcmask 130048  }
  0x18   : > { %s1434_s29 = smul.u32 96, %s152_s28  ;;  %v201_v44 = vunpack.c.l.s4 %v1621_v43  ;;  %s1628_s28 = smov 112   ;;  %vm264_vm3 = vcmask 261120   ;;  %vm266_vm4 = vcmask 392192   ;;  %vm268_vm5 = vcmask 523264  }
  0x19   : > { %v170_v36 = vunpack.c.0.s8 %v169_v34  ;;  %v172_v37 = vshrl.u32 %v171_v35, 7  ;;  %vm270_vm6 = vcmask 654336   ;;  %vm272_vm7 = vcmask 785408   ;;  %s148_s3 = sand.u32 1, %s1591_s10  }
  0x1a   : > { %s155_s5 = scalar_lea.vmem %s2307_s0, %s1434_s29  ;;  %v202_v49 = vunpack.c.0.s8 %v201_v44  ;;  %vm1629_vm8 = vmmov 0   ;;  %vm274_vm9 = vcmask 916480   ;;  %vm1226_vm10 = vcmask 1043456   ;;  %s1405_s4 = sshll.u32 %s148_s3, 3 }
  0x1b   : > { %s157_s6 = scalar_lea.vmem %s155_s5, %s1407_s30  ;;  %v1775_v40 = vsub.s32 %v170_v36, %v172_v37  ;;  %1431 = vmatprep.mubr.msk.f32.mxu0 %vm1629_vm8, %v1617_v0  ;;  %vm1232_vm11 = vcmask 293888   ;;  %s1411_s5 = sshll.u32 %s1603_s13, 1 }
  0x1c   : > { %v1724_v1 = vld [vmem:[%s157_s6 + $0x30] sm:$0xff]  ;;  %v163_v2 = vld [vmem:[%s157_s6 + $0x38] sm:$0x3]  ;;  %v1726_v3 = vld [vmem:[%s157_s6] sm:$0xff]  ;;  %v1794_v51 = vsub.s32 %v202_v49, %v172_v37 }
  0x1d   : > { %v871_v4 = vrot.slane %v1724_v1, 2  ;;  %v872_v5 = vrot.slane %v163_v2, 2  ;;  %v159_v6 = vld [vmem:[%s157_s6 + $0x8] sm:$0x3]  ;;  %v865_v7 = vrot.slane %v1726_v3, 2  ;;  %v1733_v12 = vld [vmem:[%s157_s6 + $0x18] sm:$0xff] }
  0x1e   : > { %v1730_v8 = vld [vmem:[%s157_s6 + $0x48] sm:$0xff]  ;;  %v866_v9 = vrot.slane %v159_v6, 2  ;;  %v165_v10 = vld [vmem:[%s157_s6 + $0x50] sm:$0x3]  ;;  %v161_v15 = vld [vmem:[%s157_s6 + $0x20] sm:$0x3]  ;;  %s1322_s6 = sadd.s32 %s1599_s12, %s1411_s5 }
  0x1f   : > { %v874_v11 = vrot.slane %v1730_v8, 2  ;;  %v1736_v13 = vsel %vm864_vm0, %v871_v4, %v872_v5  ;;  %v875_v14 = vrot.slane %v165_v10, 2  ;;  %v868_v16 = vrot.slane %v1733_v12, 2  ;;  %s1630_s12 = smov [#allocation2]  }
  0x20   : > { %988 = vrot.lane.b32.xlu1 %v1736_v13, %s1618_s7  ;;  %v1742_v17 = vsel %vm864_vm0, %v865_v7, %v866_v9  ;;  %v869_v18 = vrot.slane %v161_v15, 2  ;;  %v518_v21 = vrot.slane %v1733_v12, 1  ;;  %v519_v22 = vrot.slane %v161_v15, 1  ;;  %s1527_s13 = sshll.u32 %s1630_s12, 4  ;;  %s1528_s13 = int_to_ptr.vmem [resolvable:$false] %s1527_s13 }
  0x21   : > { %984 = vrot.lane.b32.xlu0 %v1742_v17, %s1618_s7  ;;  %v1747_v19 = vsel %vm864_vm0, %v874_v11, %v875_v14  ;;  %v515_v23 = vrot.slane %v1726_v3, 1  ;;  %v516_v24 = vrot.slane %v159_v6, 1  ;;  %v524_v26 = vrot.slane %v1730_v8, 1 }
  0x22   : > { %v1750_v20 = vsel %vm864_vm0, %v868_v16, %v869_v18  ;;  %v520_v25 = vsel %vm514_vm1, %v518_v21, %v519_v22  ;;  %v525_v27 = vrot.slane %v165_v10, 1  ;;  %v521_v29 = vrot.slane %v1724_v1, 1 }
  0x23   : > { %v517_v28 = vsel %vm514_vm1, %v515_v23, %v516_v24  ;;  %v522_v30 = vrot.slane %v163_v2, 1  ;;  %v881_v41 = vcombine.low %v1742_v17, %v1736_v13  ;;  %v897_v42 = vcombine.low %v1750_v20, %v1747_v19 }
  0x24   : > { %990 = vrot.lane.b32.xlu1 %v1747_v19, %s1618_s7  ;;  %v526_v31 = vsel %vm514_vm1, %v524_v26, %v525_v27  ;;  %v882_v59 = vcombine.high %v1742_v17, %v1736_v13  ;;  %v898_v60 = vcombine.high %v1750_v20, %v1747_v19  ;;  %v166_v14 = vcombine.low %v1726_v3, %v1724_v1 }
  0x25   : > { %986 = vrot.lane.b32.xlu0 %v1750_v20, %s1618_s7  ;;  %v523_v32 = vsel %vm514_vm1, %v521_v29, %v522_v30  ;;  %v547_v38 = vcombine.low %v520_v25, %v526_v31  ;;  %v889_v47 = vrot.slane %v881_v41, %v1775_v40  ;;  %v905_v48 = vrot.slane %v897_v42, %v1775_v40 }
  0x26   : > { %v531_v39 = vcombine.low %v517_v28, %v523_v32  ;;  %v548_v55 = vcombine.high %v520_v25, %v526_v31  ;;  %v532_v56 = vcombine.high %v517_v28, %v523_v32  ;;  %v896_v6 = vrot.slane %v882_v59, %v1775_v40 }
  0x27   : > { %v555_v45 = vrot.slane %v547_v38, %v1775_v40  ;;  %v913_v52 = vcombine.low %v889_v47, %v905_v48  ;;  %v914_v62 = vcombine.high %v889_v47, %v905_v48  ;;  %v912_v7 = vrot.slane %v898_v60, %v1775_v40 }
  0x28   : > { %1101 = vrot.lane.b32.xlu1 %v1750_v20, %s1619_s8  ;;  %v539_v46 = vrot.slane %v531_v39, %v1775_v40  ;;  %v1821_v2 = vrot.slane %v532_v56, %v1775_v40  ;;  %v1824_v4 = vrot.slane %v548_v55, %v1775_v40  ;;  %v182_v15 = vcombine.low %v1733_v12, %v1730_v8 }
  0x29   : > { %1099 = vrot.lane.b32.xlu0 %v1742_v17, %s1619_s8  ;;  %v1804_v54 = vrot.slane %v913_v52, %v1794_v51  ;;  %v928_v5 = vrot.slane %v914_v62, %v1794_v51  ;;  %v174_v18 = vrot.slane %v166_v14, %v1775_v40  ;;  %v930_v23 = vcombine.high %v896_v6, %v912_v7 }
  0x2a   : > { %v563_v50 = vcombine.low %v539_v46, %v555_v45  ;;  %v564_v58 = vcombine.high %v539_v46, %v555_v45  ;;  %v579_v10 = vcombine.low %v1821_v2, %v1824_v4 }
  0x2b   : > { %v945_v61 = vcombine.high %v1804_v54, %v1617_v0  ;;  %v946_v11 = vcombine.high %v928_v5, %v1617_v0  ;;  %v944_v26 = vrot.slane %v930_v23, %v1794_v51 }
  0x2c   : > { %1105 = vrot.lane.b32.xlu1 %v1747_v19, %s1619_s8  ;;  %v1799_v53 = vrot.slane %v563_v50, %v1794_v51  ;;  %v578_v63 = vrot.slane %v564_v58, %v1794_v51  ;;  %v587_v16 = vrot.slane %v579_v10, %v1794_v51  ;;  %v190_v19 = vrot.slane %v182_v15, %v1775_v40 }
  0x2d   : > { %1103 = vrot.lane.b32.xlu0 %v1736_v13, %s1619_s8  ;;  %v929_v13 = vcombine.low %v896_v6, %v912_v7  ;;  %v948_v29 = vcombine.high %v944_v26, %v1617_v0 }
  0x2e   : > { %v595_v57 = vcombine.high %v1799_v53, %v1617_v0  ;;  %v596_v9 = vcombine.high %v578_v63, %v1617_v0  ;;  %v597_v20 = vcombine.high %v587_v16, %v1617_v0  ;;  %v199_v21 = vcombine.high %v174_v18, %v190_v19 }
  0x2f   : > { %v937_v17 = vrot.slane %v929_v13, %v1794_v51  ;;  %v198_v24 = vcombine.low %v174_v18, %v190_v19 }
  0x30   : > { %751 = vrot.lane.b32.xlu1 %v520_v25, %s1619_s8 }
  0x31   : > { %749 = vrot.lane.b32.xlu0 %v517_v28, %s1619_s8  ;;  %v947_v22 = vcombine.high %v937_v17, %v1617_v0  ;;  %v1857_v27 = vrot.slane %v198_v24, %v1794_v51 }
  0x34   : > { %755 = vrot.lane.b32.xlu1 %v526_v31, %s1619_s8 }
  0x35   : > { %753 = vrot.lane.b32.xlu0 %v523_v32, %s1619_s8 }
  0x38   : > { %636 = vrot.lane.b32.xlu1 %v520_v25, %s1618_s7  ;;  %v1852_v25 = vrot.slane %v199_v21, %v1794_v51 }
  0x39   : > { %634 = vrot.lane.b32.xlu0 %v517_v28, %s1618_s7  ;;  %v230_v28 = vcombine.high %v1857_v27, %v1617_v0 }
  0x3c   : > { %640 = vrot.lane.b32.xlu1 %v526_v31, %s1618_s7 }
  0x3d   : > { %638 = vrot.lane.b32.xlu0 %v523_v32, %s1618_s7 }
  0x40   : > { %282 = vrot.lane.b32.xlu1 %v1733_v12, %s1618_s7 }
  0x41   : > { %280 = vrot.lane.b32.xlu0 %v1726_v3, %s1618_s7 }
  0x44   : > { %286 = vrot.lane.b32.xlu1 %v1730_v8, %s1618_s7 }
  0x45   : > { %284 = vrot.lane.b32.xlu0 %v1724_v1, %s1618_s7  ;;  %s150_s7 = scalar_lea.vmem [#allocation2], %s1405_s4 }
  0x48   : > { %397 = vrot.lane.b32.xlu1 %v1733_v12, %s1619_s8 }
  0x49   : > { %395 = vrot.lane.b32.xlu0 %v1726_v3, %s1619_s8 }
  0x4c   : > { %401 = vrot.lane.b32.xlu1 %v1730_v8, %s1619_s8 }
  0x4d   : > { %399 = vrot.lane.b32.xlu0 %v1724_v1, %s1619_s8  ;;  %s1326_s8 = sshll.u32 %s150_s7, 4  ;;  %s2252_s8 = int_to_ptr.vmem [resolvable:$true] %s1326_s8 }
  0x4e   : > { %p1530_p2 = scmp.lt.s32.totalorder %s2252_s8, %s1528_s13 }
  0x50   : > { %600 = vrot.lane.b32.xlu1 %v595_v57, %s1622_s17 }
  0x51   : > { %950 = vrot.lane.b32.xlu0 %v945_v61, %s1622_s17 }
  0x54   : > { %604 = vrot.lane.b32.xlu1 %v578_v63, %s1623_s18 }
  0x55   : > { %954 = vrot.lane.b32.xlu0 %v928_v5, %s1623_s18 }
  0x58   : > { %608 = vrot.lane.b32.xlu1 %v596_v9, %s1624_s21 }
  0x59   : > { %958 = vrot.lane.b32.xlu0 %v946_v11, %s1624_s21 }
  0x5c   : > { %612 = vrot.lane.b32.xlu1 %v587_v16, %s1625_s24 }
  0x5d   : > { %962 = vrot.lane.b32.xlu0 %v937_v17, %s1625_s24 }
  0x60   : > { %616 = vrot.lane.b32.xlu1 %v597_v20, %s1626_s25 }
  0x61   : > { %966 = vrot.lane.b32.xlu0 %v947_v22, %s1626_s25 }
  0x64   : > { %239 = vrot.lane.b32.xlu1 %v1852_v25, %s1623_s18 }
  0x65   : > { %970 = vrot.lane.b32.xlu0 %v944_v26, %s1627_s26 }
  0x69   : > { %235 = vrot.lane.b32.xlu0 %v230_v28, %s1622_s17 }
  0x6d   : > { %974 = vrot.lane.b32.xlu0 %v948_v29, %s1628_s28 }
  0x92   : > { %v1867_v30 = vpop.permute.xlu1 %988 }
  0x93   : > { %v1869_v31 = vpop.permute.xlu0 %984 }
  0x94   : > { %v996_v11 = vcombine.low %v1869_v31, %v1867_v30 }
  0x96   : > { %v1871_v32 = vpop.permute.xlu1 %990  ;;  %v1924_v22 = vrot.slane %v996_v11, %v1775_v40 }
  0x97   : > { %v1873_v33 = vpop.permute.xlu0 %986 }
  0x98   : > { %v1012_v63 = vcombine.low %v1873_v33, %v1871_v32 }
  0x9a   : > { %v1875_v34 = vpop.permute.xlu1 %1101  ;;  %v1920_v16 = vrot.slane %v1012_v63, %v1775_v40 }
  0x9b   : > { %v1877_v35 = vpop.permute.xlu0 %1099 }
  0x9e   : > { %v1879_v36 = vpop.permute.xlu1 %1105 }
  0x9f   : > { %v1881_v37 = vpop.permute.xlu0 %1103 }
  0xa2   : > { %v1883_v38 = vpop.permute.xlu1 %751 }
  0xa3   : > { %v1885_v39 = vpop.permute.xlu0 %749 }
  0xa6   : > { %v1887_v41 = vpop.permute.xlu1 %755 }
  0xa7   : > { %v1889_v42 = vpop.permute.xlu0 %753  ;;  %v777_v23 = vcombine.low %v1883_v38, %v1887_v41 }
  0xa8   : > { %v761_v28 = vcombine.low %v1885_v39, %v1889_v42 }
  0xaa   : > { %v1891_v43 = vpop.permute.xlu1 %636 }
  0xab   : > { %v1893_v44 = vpop.permute.xlu0 %634 }
  0xae   : > { %v1895_v45 = vpop.permute.xlu1 %640 }
  0xaf   : > { %v1897_v46 = vpop.permute.xlu0 %638 }
  0xb2   : > { %v283_v47 = vpop.permute.xlu1 %282 }
  0xb3   : > { %v281_v48 = vpop.permute.xlu0 %280 }
  0xb6   : > { %v287_v49 = vpop.permute.xlu1 %286 }
  0xb7   : > { %v308_v50 = vcombine.low %v283_v47, %v287_v49  ;;  %v309_v52 = vcombine.high %v283_v47, %v287_v49  ;;  %v285_v55 = vpop.permute.xlu0 %284 }
  0xb8   : > { %v292_v56 = vcombine.low %v281_v48, %v285_v55  ;;  %v293_v57 = vcombine.high %v281_v48, %v285_v55  ;;  %v1029_v55 = vcombine.high %v1924_v22, %v1920_v16 }
  0xb9   : > { %v316_v58 = vrot.slane %v308_v50, %v1775_v40  ;;  %v1901_v59 = vrot.slane %v309_v52, %v1775_v40  ;;  %v997_v50 = vcombine.high %v1869_v31, %v1867_v30  ;;  %v1013_v52 = vcombine.high %v1873_v33, %v1871_v32 }
  0xba   : > { %v300_v60 = vrot.slane %v292_v56, %v1775_v40  ;;  %v1905_v61 = vrot.slane %v293_v57, %v1775_v40  ;;  %v398_v62 = vpop.permute.xlu1 %397  ;;  %v1127_v30 = vcombine.low %v1875_v34, %v1879_v36  ;;  %v1111_v31 = vcombine.low %v1877_v35, %v1881_v37 }
  0xbb   : > { %v396_v5 = vpop.permute.xlu0 %395  ;;  %v1958_v32 = vrot.slane %v777_v23, %v1775_v40  ;;  %v1963_v33 = vrot.slane %v761_v28, %v1775_v40  ;;  %v778_v23 = vcombine.high %v1883_v38, %v1887_v41 }
  0xbc   : > { %v324_v6 = vcombine.low %v300_v60, %v316_v58  ;;  %v325_v7 = vcombine.high %v300_v60, %v316_v58  ;;  %v340_v9 = vcombine.low %v1905_v61, %v1901_v59  ;;  %v341_v10 = vcombine.high %v1905_v61, %v1901_v59 }
  0xbe   : > { %v402_v13 = vpop.permute.xlu1 %401  ;;  %v339_v14 = vrot.slane %v325_v7, %v1794_v51  ;;  %v1917_v15 = vrot.slane %v324_v6, %v1794_v51 }
  0xbf   : > { %v423_v17 = vcombine.low %v398_v62, %v402_v13  ;;  %v424_v18 = vcombine.high %v398_v62, %v402_v13  ;;  %v400_v19 = vpop.permute.xlu0 %399  ;;  %v1971_v13 = vrot.slane %v1013_v52, %v1775_v40 }
  0xc0   : > { %v407_v20 = vcombine.low %v396_v5, %v400_v19  ;;  %v408_v21 = vcombine.high %v396_v5, %v400_v19  ;;  %365 = vrot.lane.b32.xlu1 %v339_v14, %s1623_s18  ;;  %v356_v48 = vcombine.high %v1917_v15, %v1617_v0  ;;  %v357_v5 = vcombine.high %v339_v14, %v1617_v0 }
  0xc1   : > { %v431_v24 = vrot.slane %v423_v17, %v1775_v40  ;;  %v1930_v26 = vrot.slane %v424_v18, %v1775_v40  ;;  %v1112_v19 = vcombine.high %v1877_v35, %v1881_v37  ;;  %v1011_v35 = vrot.slane %v997_v50, %v1775_v40 }
  0xc2   : > { %v415_v29 = vrot.slane %v407_v20, %v1775_v40  ;;  %v1936_v47 = vrot.slane %v408_v21, %v1775_v40  ;;  %v601_v49 = vpop.permute.xlu1 %600  ;;  %v1982_v20 = vrot.slane %v1127_v30, %v1775_v40  ;;  %v1985_v21 = vrot.slane %v1111_v31, %v1775_v40 }
  0xc3   : > { %v951_v56 = vpop.permute.xlu0 %950  ;;  %v627_v57 = vsel %vm262_vm2, %v1799_v53, %v601_v49  ;;  %v1995_v37 = vrot.slane %v1029_v55, %v1794_v51  ;;  %v1044_v38 = vcombine.low %v1011_v35, %v1971_v13  ;;  %v792_v50 = vrot.slane %v778_v23, %v1775_v40 }
  0xc4   : > { %v439_v58 = vcombine.low %v415_v29, %v431_v24  ;;  %v440_v60 = vcombine.high %v415_v29, %v431_v24  ;;  %v455_v62 = vcombine.low %v1936_v47, %v1930_v26  ;;  %v456_v63 = vcombine.high %v1936_v47, %v1930_v26  ;;  %361 = vrot.lane.b32.xlu1 %v356_v48, %s1622_s17 }
  0xc5   : > { %v977_v53 = vsel %vm262_vm2, %v1804_v54, %v951_v56  ;;  %v1128_v54 = vcombine.high %v1875_v34, %v1879_v36  ;;  %v762_v34 = vcombine.high %v1885_v39, %v1889_v42  ;;  %v794_v36 = vcombine.high %v1963_v33, %v1958_v32 }
  0xc6   : > { %v454_v6 = vrot.slane %v440_v60, %v1794_v51  ;;  %v1968_v7 = vrot.slane %v439_v58, %v1794_v51  ;;  %v605_v11 = vpop.permute.xlu1 %604  ;;  %v1126_v42 = vrot.slane %v1112_v19, %v1775_v40  ;;  %v1144_v49 = vcombine.high %v1985_v21, %v1982_v20 }
  0xc7   : > { %v955_v17 = vpop.permute.xlu0 %954  ;;  %v628_v18 = vsel %vm264_vm3, %v627_v57, %v605_v11  ;;  %v1142_v41 = vrot.slane %v1128_v54, %v1775_v40  ;;  %v776_v52 = vrot.slane %v762_v34, %v1775_v40  ;;  %v662_v55 = vcombine.low %v1891_v43, %v1895_v45 }
  0xc8   : > { %369 = vrot.lane.b32.xlu1 %v357_v5, %s1624_s21  ;;  %480 = vrot.lane.b32.xlu0 %v454_v6, %s1623_s18  ;;  %v978_v14 = vsel %vm264_vm3, %v977_v53, %v955_v17  ;;  %v471_v24 = vcombine.high %v1968_v7, %v1617_v0  ;;  %v646_v56 = vcombine.low %v1893_v44, %v1897_v46 }
  0xc9   : > { %v808_v57 = vrot.slane %v794_v36, %v1794_v51  ;;  %v472_v58 = vcombine.high %v454_v6, %v1617_v0  ;;  %v1159_v5 = vcombine.low %v1126_v42, %v1142_v41  ;;  %v1052_v11 = vrot.slane %v1044_v38, %v1794_v51 }
  0xca   : > { %v609_v28 = vpop.permute.xlu1 %608  ;;  %v809_v17 = vcombine.low %v776_v52, %v792_v50  ;;  %v654_v54 = vrot.slane %v646_v56, %v1775_v40  ;;  %v1158_v6 = vrot.slane %v1144_v49, %v1794_v51  ;;  %v1045_v36 = vcombine.high %v1011_v35, %v1971_v13 }
  0xcb   : > { %v959_v29 = vpop.permute.xlu0 %958  ;;  %v629_v48 = vsel %vm266_vm4, %v628_v18, %v609_v28  ;;  %v670_v18 = vrot.slane %v662_v55, %v1775_v40  ;;  %v663_v28 = vcombine.high %v1891_v43, %v1895_v45  ;;  %v1160_v13 = vcombine.high %v1126_v42, %v1142_v41 }
  0xcc   : > { %1069 = vrot.lane.b32.xlu1 %v1995_v37, %s1623_s18  ;;  %476 = vrot.lane.b32.xlu0 %v471_v24, %s1622_s17  ;;  %v979_v39 = vsel %vm266_vm4, %v978_v14, %v959_v29  ;;  %v1167_v24 = vrot.slane %v1159_v5, %v1794_v51  ;;  %v647_v29 = vcombine.high %v1893_v44, %v1897_v46 }
  0xcd   : > { %v817_v38 = vrot.slane %v809_v17, %v1794_v51  ;;  %v793_v35 = vcombine.low %v1963_v33, %v1958_v32  ;;  %v1059_v43 = vrot.slane %v1045_v36, %v1794_v51  ;;  %v810_v45 = vcombine.high %v776_v52, %v792_v50 }
  0xce   : > { %v613_v60 = vpop.permute.xlu1 %612  ;;  %v677_v44 = vrot.slane %v663_v28, %v1775_v40  ;;  %v661_v46 = vrot.slane %v647_v29, %v1775_v40  ;;  %v1028_v56 = vcombine.low %v1924_v22, %v1920_v16  ;;  %v1174_v32 = vrot.slane %v1160_v13, %v1794_v51 }
  0xcf   : > { %v963_v30 = vpop.permute.xlu0 %962  ;;  %v630_v31 = vsel %vm268_vm5, %v629_v48, %v613_v60  ;;  %v679_v48 = vcombine.high %v654_v54, %v670_v18  ;;  %v824_v42 = vrot.slane %v810_v45, %v1794_v51  ;;  %v2056_v33 = vrot.slane %v793_v35, %v1794_v51 }
  0xd0   : > { %834 = vrot.lane.b32.xlu1 %v808_v57, %s1623_s18  ;;  %484 = vrot.lane.b32.xlu0 %v472_v58, %s1624_s21  ;;  %v980_v53 = vsel %vm268_vm5, %v979_v39, %v963_v30  ;;  %v694_v41 = vcombine.low %v661_v46, %v677_v44  ;;  %v1143_v50 = vcombine.low %v1985_v21, %v1982_v20 }
  0xd1   : > { %v693_v55 = vrot.slane %v679_v48, %v1794_v51  ;;  %v825_v52 = vcombine.high %v2056_v33, %v1617_v0  ;;  %v2066_v22 = vrot.slane %v1028_v56, %v1794_v51  ;;  %v1061_v58 = vcombine.high %v1995_v37, %v1617_v0 }
  0xd2   : > { %v617_v19 = vpop.permute.xlu1 %616  ;;  %v702_v16 = vrot.slane %v694_v41, %v1794_v51  ;;  %v2075_v20 = vrot.slane %v1143_v50, %v1794_v51  ;;  %v678_v21 = vcombine.low %v654_v54, %v670_v18  ;;  %v826_v30 = vcombine.high %v808_v57, %v1617_v0 }
  0xd3   : > { %v967_v14 = vpop.permute.xlu0 %966  ;;  %v2026_v23 = vsel %vm270_vm6, %v630_v31, %v617_v19  ;;  %v1060_v60 = vcombine.high %v2066_v22, %v1617_v0  ;;  %v1062_v37 = vcombine.high %v1052_v11, %v1617_v0  ;;  %v827_v57 = vcombine.high %v817_v38, %v1617_v0 }
  0xd4   : > { %1077 = vrot.lane.b32.xlu1 %v1052_v11, %s1625_s24  ;;  %1184 = vrot.lane.b32.xlu0 %v1158_v6, %s1623_s18  ;;  %v981_v34 = vsel %vm270_vm6, %v980_v53, %v967_v14  ;;  %v1175_v31 = vcombine.high %v2075_v20, %v1617_v0  ;;  %v1176_v53 = vcombine.high %v1158_v6, %v1617_v0 }
  0xd5   : > { %v2087_v5 = vrot.slane %v678_v21, %v1794_v51  ;;  %v1063_v11 = vcombine.high %v1059_v43, %v1617_v0  ;;  %v1177_v18 = vcombine.high %v1167_v24, %v1617_v0  ;;  %v1178_v54 = vcombine.high %v1174_v32, %v1617_v0 }
  0xd6   : > { %v711_v6 = vcombine.high %v693_v55, %v1617_v0  ;;  %v828_v19 = vcombine.high %v824_v42, %v1617_v0  ;;  %v712_v14 = vcombine.high %v702_v16, %v1617_v0  ;;  %v695_v36 = vcombine.high %v661_v46, %v677_v44 }
  0xd7   : > { %v971_v39 = vpop.permute.xlu0 %970  ;;  %v710_v17 = vcombine.high %v2087_v5, %v1617_v0  ;;  %v348_v28 = vrot.slane %v340_v9, %v1794_v51  ;;  %v231_v9 = vcombine.high %v1852_v25, %v1617_v0  ;;  %v355_v13 = vrot.slane %v341_v10, %v1794_v51  ;;  %v2164_v10 = vpop.permute.xlu1 %239 }
  0xd8   : > { %842 = vrot.lane.b32.xlu1 %v817_v38, %s1625_s24  ;;  %1192 = vrot.lane.b32.xlu0 %v1167_v24, %s1625_s24  ;;  %v2041_v49 = vsel %vm272_vm7, %v981_v34, %v971_v39  ;;  %v580_v34 = vcombine.high %v1821_v2, %v1824_v4  ;;  %v463_v24 = vrot.slane %v455_v62, %v1794_v51 }
  0xd9   : > { %v167_v2 = vcombine.high %v1726_v3, %v1724_v1  ;;  %v183_v4 = vcombine.high %v1733_v12, %v1730_v8  ;;  %v709_v48 = vrot.slane %v695_v36, %v1794_v51  ;;  %v358_v39 = vcombine.high %v348_v28, %v1617_v0 }
  0xda   : > { %v594_v29 = vrot.slane %v580_v34, %v1794_v51  ;;  %v473_v8 = vcombine.high %v463_v24, %v1617_v0  ;;  %v359_v45 = vcombine.high %v355_v13, %v1617_v0 }
  0xdb   : > { %v181_v62 = vrot.slane %v167_v2, %v1775_v40  ;;  %v197_v38 = vrot.slane %v183_v4, %v1775_v40  ;;  %v713_v25 = vcombine.high %v709_v48, %v1617_v0  ;;  %v470_v40 = vrot.slane %v456_v63, %v1794_v51  ;;  %v2166_v47 = vpop.permute.xlu0 %235 }
  0xdc   : > { %1085 = vrot.lane.b32.xlu1 %v1059_v43, %s1627_s26  ;;  %719 = vrot.lane.b32.xlu0 %v693_v55, %s1623_s18  ;;  %v598_v1 = vcombine.high %v594_v29, %v1617_v0 }
  0xdd   : > { %v214_v3 = vcombine.low %v181_v62, %v197_v38  ;;  %v215_v43 = vcombine.high %v181_v62, %v197_v38  ;;  %v474_v59 = vcombine.high %v470_v40, %v1617_v0 }
  0xdf   : > { %v222_v12 = vrot.slane %v214_v3, %v1794_v51  ;;  %v229_v26 = vrot.slane %v215_v43, %v1794_v51  ;;  %v975_v44 = vpop.permute.xlu0 %974 }
  0xe0   : > { %850 = vrot.lane.b32.xlu1 %v824_v42, %s1627_s26  ;;  %1200 = vrot.lane.b32.xlu0 %v1174_v32, %s1627_s26 }
  0xe1   : > { %v232_v35 = vcombine.high %v222_v12, %v1617_v0  ;;  %v233_v61 = vcombine.high %v229_v26, %v1617_v0 }
  0xe4   : > { %830 = vrot.lane.b32.xlu1 %v825_v52, %s1622_s17  ;;  %727 = vrot.lane.b32.xlu0 %v702_v16, %s1625_s24 }
  0xe8   : > { %1073 = vrot.lane.b32.xlu1 %v1061_v58, %s1624_s21  ;;  %1065 = vrot.lane.b32.xlu0 %v1060_v60, %s1622_s17 }
  0xec   : > { %838 = vrot.lane.b32.xlu1 %v826_v30, %s1624_s21  ;;  %1180 = vrot.lane.b32.xlu0 %v1175_v31, %s1622_s17 }
  0xf0   : > { %1081 = vrot.lane.b32.xlu1 %v1062_v37, %s1626_s25  ;;  %1188 = vrot.lane.b32.xlu0 %v1176_v53, %s1624_s21 }
  0xf4   : > { %846 = vrot.lane.b32.xlu1 %v827_v57, %s1626_s25  ;;  %715 = vrot.lane.b32.xlu0 %v710_v17, %s1622_s17  ;;  %s1412_s17 = sshll.u32 %s1322_s6, 7 }
  0xf8   : > { %1089 = vrot.lane.b32.xlu1 %v1063_v11, %s1628_s28  ;;  %1196 = vrot.lane.b32.xlu0 %v1177_v18, %s1626_s25 }
  0xfc   : > { %1204 = vrot.lane.b32.xlu1 %v1178_v54, %s1628_s28  ;;  %723 = vrot.lane.b32.xlu0 %v711_v6, %s1624_s21 }
 0x100   : > { %854 = vrot.lane.b32.xlu1 %v828_v19, %s1628_s28  ;;  %731 = vrot.lane.b32.xlu0 %v712_v14, %s1626_s25 }
 0x104   : > { %488 = vrot.lane.b32.xlu1 %v463_v24, %s1625_s24  ;;  %373 = vrot.lane.b32.xlu0 %v348_v28, %s1625_s24 }
 0x108   : > { %735 = vrot.lane.b32.xlu1 %v709_v48, %s1627_s26  ;;  %620 = vrot.lane.b32.xlu0 %v594_v29, %s1627_s26 }
 0x10c   : > { %377 = vrot.lane.b32.xlu1 %v358_v39, %s1626_s25  ;;  %243 = vrot.lane.b32.xlu0 %v231_v9, %s1624_s21 }
 0x110   : > { %624 = vrot.lane.b32.xlu1 %v598_v1, %s1628_s28  ;;  %492 = vrot.lane.b32.xlu0 %v473_v8, %s1626_s25 }
 0x114   : > { %247 = vrot.lane.b32.xlu1 %v222_v12, %s1625_s24  ;;  %739 = vrot.lane.b32.xlu0 %v713_v25, %s1628_s28  ;;  %s2257_s24 = scalar_lea.hbm %s2309_s2, %s1412_s17 }
 0x118   : > { %496 = vrot.lane.b32.xlu1 %v470_v40, %s1627_s26  ;;  %381 = vrot.lane.b32.xlu0 %v355_v13, %s1627_s26 }
 0x11c   : > { %385 = vrot.lane.b32.xlu1 %v359_v45, %s1628_s28  ;;  %251 = vrot.lane.b32.xlu0 %v232_v35, %s1626_s25  ;;  %v983_v45 = vsel %vm274_vm9, %v2041_v49, %v975_v44  ;;  %s1311_s25 = scalar_lea.sflag [#allocation3], %s148_s3 }
 0x120   : > { %255 = vrot.lane.b32.xlu1 %v229_v26, %s1627_s26  ;;  %500 = vrot.lane.b32.xlu0 %v474_v59, %s1628_s28  ;;  %s1523_s26 = scalar_lea.vmem %s2252_s8, 128 }
 0x121   : > { %p1524_p13 = scmp.ne.s32.totalorder %s2252_s8, %s1523_s26 }
 0x123   : > { %p1525_p0 = pnand %p1524_p13, %p1697_p3 }
 0x124   : > { %259 = vrot.lane.b32.xlu0 %v233_v61, %s1628_s28  ;;  %s1529_s28 = scalar_lea.vmem %s1528_s13, 256 }
 0x125   : > { %p1526_p1 = pneg %p1525_p0  ;;  %p1531_p4 = scmp.lt.s32.totalorder %s1529_s28, %s1523_s26 }
 0x127   : > { %p1532_p5 = por %p1531_p4, %p1530_p2 }
 0x129   : > { %p1533_p6 = pnand %p1532_p5, %p1526_p1 }
 0x132   : > { %v366_v63 = vpop.permute.xlu1 %365 }
 0x136   : > { %v362_v46 = vpop.permute.xlu1 %361 }
 0x137   : > { %v388_v51 = vsel %vm262_vm2, %v1917_v15, %v362_v46 }
 0x138   : > { %v389_v55 = vsel %vm264_vm3, %v388_v51, %v366_v63 }
 0x13a   : > { %v370_v56 = vpop.permute.xlu1 %369  ;;  %v481_v41 = vpop.permute.xlu0 %480 }
 0x13b   : > { %v2172_v42 = vsel %vm266_vm4, %v389_v55, %v370_v56 }
 0x13e   : > { %v1070_v32 = vpop.permute.xlu1 %1069  ;;  %v477_v50 = vpop.permute.xlu0 %476 }
 0x13f   : > { %v503_v52 = vsel %vm262_vm2, %v1968_v7, %v477_v50 }
 0x140   : > { %v504_v16 = vsel %vm264_vm3, %v503_v52, %v481_v41 }
 0x142   : > { %v835_v58 = vpop.permute.xlu1 %834  ;;  %v485_v60 = vpop.permute.xlu0 %484 }
 0x143   : > { %v2178_v21 = vsel %vm266_vm4, %v504_v16, %v485_v60 }
 0x146   : > { %v1078_v15 = vpop.permute.xlu1 %1077  ;;  %v1185_v30 = vpop.permute.xlu0 %1184 }
 0x14a   : > { %v843_v31 = vpop.permute.xlu1 %842  ;;  %v1193_v37 = vpop.permute.xlu0 %1192 }
 0x14e   : > { %v1086_v53 = vpop.permute.xlu1 %1085  ;;  %v720_v57 = vpop.permute.xlu0 %719 }
 0x152   : > { %v851_v17 = vpop.permute.xlu1 %850  ;;  %v1201_v11 = vpop.permute.xlu0 %1200 }
 0x156   : > { %v831_v18 = vpop.permute.xlu1 %830  ;;  %v728_v54 = vpop.permute.xlu0 %727 }
 0x157   : > { %v857_v51 = vsel %vm262_vm2, %v2056_v33, %v831_v18 }
 0x158   : > { %v858_v55 = vsel %vm264_vm3, %v857_v51, %v835_v58 }
 0x15a   : > { %v1074_v6 = vpop.permute.xlu1 %1073  ;;  %v1066_v19 = vpop.permute.xlu0 %1065 }
 0x15b   : > { %v1092_v7 = vsel %vm262_vm2, %v2066_v22, %v1066_v19 }
 0x15c   : > { %v1093_v36 = vsel %vm264_vm3, %v1092_v7, %v1070_v32 }
 0x15d   : > { %v1094_v2 = vsel %vm266_vm4, %v1093_v36, %v1074_v6  ;;  %v263_v36 = vsel %vm262_vm2, %v1857_v27, %v2166_v47 }
 0x15e   : > { %v839_v14 = vpop.permute.xlu1 %838  ;;  %v1181_v34 = vpop.permute.xlu0 %1180  ;;  %v1095_v4 = vsel %vm268_vm5, %v1094_v2, %v1078_v15 }
 0x15f   : > { %v1207_v29 = vsel %vm262_vm2, %v2075_v20, %v1181_v34  ;;  %v859_v44 = vsel %vm266_vm4, %v858_v55, %v839_v14 }
 0x160   : > { %v1208_v48 = vsel %vm264_vm3, %v1207_v29, %v1185_v30  ;;  %v860_v32 = vsel %vm268_vm5, %v859_v44, %v843_v31 }
 0x162   : > { %v1082_v24 = vpop.permute.xlu1 %1081  ;;  %v1189_v28 = vpop.permute.xlu0 %1188 }
 0x163   : > { %v1096_v38 = vsel %vm270_vm6, %v1095_v4, %v1082_v24  ;;  %v1209_v22 = vsel %vm266_vm4, %v1208_v48, %v1189_v28 }
 0x164   : > { %v1097_v1 = vsel %vm272_vm7, %v1096_v38, %v1086_v53  ;;  %v1210_v3 = vsel %vm268_vm5, %v1209_v22, %v1193_v37 }
 0x166   : > { %v847_v9 = vpop.permute.xlu1 %846  ;;  %v716_v62 = vpop.permute.xlu0 %715 }
 0x167   : > { %v742_v41 = vsel %vm262_vm2, %v2087_v5, %v716_v62  ;;  %v861_v16 = vsel %vm270_vm6, %v860_v32, %v847_v9 }
 0x168   : > { %v743_v60 = vsel %vm264_vm3, %v742_v41, %v720_v57  ;;  %v862_v33 = vsel %vm272_vm7, %v861_v16, %v851_v17 }
 0x16a   : > { %v1090_v39 = vpop.permute.xlu1 %1089  ;;  %v1197_v8 = vpop.permute.xlu0 %1196 }
 0x16b   : > { %v1098_v20 = vsel %vm274_vm9, %v1097_v1, %v1090_v39  ;;  %v1211_v12 = vsel %vm270_vm6, %v1210_v3, %v1197_v8 }
 0x16c   : > { %v1224_v25 = vrot.slane %v1098_v20, 4  ;;  %v1212_v35 = vsel %vm272_vm7, %v1211_v12, %v1201_v11  ;;  %v1231_v12 = vld [vmem:[%s2308_s1] sm:$0xff] }
 0x16e   : > { %v1205_v40 = vpop.permute.xlu1 %1204  ;;  %v724_v13 = vpop.permute.xlu0 %723  ;;  %v1230_v26 = vsel %vm1226_vm10, %v983_v45, %v1224_v25 }
 0x16f   : > { %v1213_v43 = vsel %vm274_vm9, %v1212_v35, %v1205_v40  ;;  %v744_v15 = vsel %vm266_vm4, %v743_v60, %v724_v13 }
 0x170   : > { %1422 = vmatpush3.msk.msra.mxu0 %vm1226_vm10, %v1213_v43  ;;  %v745_v53 = vsel %vm268_vm5, %v744_v15, %v728_v54 }
 0x171   : > { %1423 = vmatprep.subr.mxu0 %v1617_v0 }
 0x172   : > { %v855_v59 = vpop.permute.xlu1 %854  ;;  %1424 = vmatpush3.msra.mxu0 %v1230_v26  ;;  %v732_v61 = vpop.permute.xlu0 %731 }
 0x173   : > { %1425 = vmatprep.subr.mxu0 %v1617_v0  ;;  %v863_v37 = vsel %vm274_vm9, %v862_v33, %v855_v59  ;;  %v746_v5 = vsel %vm270_vm6, %v745_v53, %v732_v61 }
 0x174   : > { %v1221_v11 = vrot.slane %v863_v37, 4 }
 0x176   : > { %v489_v63 = vpop.permute.xlu1 %488  ;;  %v374_v46 = vpop.permute.xlu0 %373 }
 0x177   : > { %v506_v28 = vsel %vm268_vm5, %v2178_v21, %v489_v63  ;;  %v391_v29 = vsel %vm268_vm5, %v2172_v42, %v374_v46 }
 0x17a   : > { %v736_v56 = vpop.permute.xlu1 %735  ;;  %v621_v49 = vpop.permute.xlu0 %620 }
 0x17b   : > { %v747_v31 = vsel %vm272_vm7, %v746_v5, %v736_v56  ;;  %v632_v14 = vsel %vm272_vm7, %v2026_v23, %v621_v49  ;;  %v265_v23 = vsel %vm264_vm3, %v263_v36, %v2164_v10 }
 0x17e   : > { %v378_v50 = vpop.permute.xlu1 %377  ;;  %v244_v52 = vpop.permute.xlu0 %243 }
 0x17f   : > { %v392_v2 = vsel %vm270_vm6, %v391_v29, %v378_v50  ;;  %v267_v62 = vsel %vm266_vm4, %v265_v23, %v244_v52 }
 0x182   : > { %v625_v58 = vpop.permute.xlu1 %624  ;;  %v493_v30 = vpop.permute.xlu0 %492 }
 0x183   : > { %v633_v24 = vsel %vm274_vm9, %v632_v14, %v625_v58  ;;  %v507_v4 = vsel %vm270_vm6, %v506_v28, %v493_v30 }
 0x184   : > { %v1218_v48 = vrot.slane %v633_v24, 4 }
 0x186   : > { %v248_v18 = vpop.permute.xlu1 %247  ;;  %v740_v6 = vpop.permute.xlu0 %739 }
 0x187   : > { %v748_v19 = vsel %vm274_vm9, %v747_v31, %v740_v6  ;;  %v269_v22 = vsel %vm268_vm5, %v267_v62, %v248_v18 }
 0x188   : > { %v1229_v57 = vsel %vm1226_vm10, %v748_v19, %v1221_v11 }
 0x189   : > { %1426 = vmatpush3.msra.mxu0 %v1229_v57 }
 0x18a   : > { %v497_v7 = vpop.permute.xlu1 %496  ;;  %v382_v17 = vpop.permute.xlu0 %381  ;;  %1427 = vmatprep.subr.mxu0 %v1617_v0 }
 0x18b   : > { %v508_v9 = vsel %vm272_vm7, %v507_v4, %v497_v7  ;;  %v393_v27 = vsel %vm272_vm7, %v392_v2, %v382_v17 }
 0x18e   : > { %v386_v54 = vpop.permute.xlu1 %385  ;;  %v252_v34 = vpop.permute.xlu0 %251 }
 0x18f   : > { %v394_v21 = vsel %vm274_vm9, %v393_v27, %v386_v54  ;;  %v271_v10 = vsel %vm270_vm6, %v269_v22, %v252_v34 }
 0x190   : > { %v1215_v1 = vrot.slane %v394_v21, 4 }
 0x192   : > { %v501_v47 = vpop.permute.xlu0 %500  ;;  %v256_v38 = vpop.permute.xlu1 %255 }
 0x193   : > { %v509_v42 = vsel %vm274_vm9, %v508_v9, %v501_v47  ;;  %v273_v3 = vsel %vm272_vm7, %v271_v10, %v256_v38 }
 0x194   : > { %v1228_v39 = vsel %vm1226_vm10, %v509_v42, %v1218_v48 }
 0x195   : > { %1428 = vmatpush3.msra.mxu0 %v1228_v39 }
 0x196   : > { %v260_v8 = vpop.permute.xlu0 %259  ;;  %1429 = vmatprep.subr.mxu0 %v1617_v0 }
 0x197   : > { %v275_v20 = vsel %vm274_vm9, %v273_v3, %v260_v8 }
 0x198   : > { %v1227_v25 = vsel %vm1226_vm10, %v275_v20, %v1215_v1 }
 0x199   : > { %1430 = vmatpush3.msra.mxu0 %v1227_v25 }
 0x19a   : > { %1432 = vmatmul.mubr.msk.f32.vlgmr.msra.gmra.mxu0 %vm1232_vm11, %v1231_v12 }
 0x25a   : > { %v1305_v0 = vpop.f32.mrf.mxu0 }
 0x25b   : > { %1309 = vst [vmem:[%s150_s7] sm:$0xff] %v1305_v0 }
 0x25c   : > { %v1433_v40 = vpop.f32.mrf.mxu0 }
 0x25d   : > { %1536 = shalt.err (!%p1533_p6)
}
 0x25e   : > { %s1537_s29 = scalar_lea.hbm %s2257_s24, 128  ;;  %s1541_s4 = scalar_lea.hbm %s2309_s2, 512 }
 0x25f   : > { %p1538_p7 = scmp.ne.s32.totalorder %s2257_s24, %s1537_s29  ;;  %p1542_p11 = scmp.lt.s32.totalorder %s2257_s24, %s2309_s2 }
 0x260   : > { %p1543_p12 = scmp.lt.s32.totalorder %s1541_s4, %s1537_s29 }
 0x261   : > { %p1539_p9 = pnand %p1538_p7, %p1697_p3 }
 0x262   : > { %p1544_p13 = por %p1543_p12, %p1542_p11 }
 0x263   : > { %p1540_p10 = pneg %p1539_p9 }
 0x265   : > { %p1545_p0 = pnand %p1544_p13, %p1540_p10 }
 0x267   : > { %1548 = shalt.err (!%p1545_p0)
}
 0x268   : > { %1435 = dma.vmem_to_hbm [thread:$0]  (%p1697_p3), %s2252_s8, 128, %s2257_s24, %s1311_s25  }
 0x269 PF: > { %p1441_p1 = scmp.ge.s32.totalorder %s1615_s16, 2  ;;  %s1338_s7 = sand.u32 1, %s1587_s9  }
 0x26a   : > { %s1339_s17 = scalar_lea.sflag [#allocation3], %s1338_s7 }
 0x26b   : > { %p1438_p2 = pnand %p1441_p1, %p1706_p8 }
 0x26d   : > { %p1439_p4 = pneg %p1438_p2 }
 0x26f   : > { %1582 = dma.done.wait (%p1439_p4), %s1339_s17, 128  }
 0x270   : > { %1584 = vsyncadd (%p1439_p4), %s1339_s17, 4294967168  ;;  %s15_s16 = sadd.s32 1, %s1615_s16   ;;  %s2312_s9 = smov %s1591_s10 }
 0x271   : > { %p12_p5 = scmp.ge.s32.totalorder %s15_s16, 6   ;;  %s2313_s10 = smov %s1595_s11 }
 0x272   : > { %s2314_s11 = smov %s1715_s27  ;;  %s2315_s12 = smov %s1607_s14 }
 0x273   : > { %s2316_s13 = smov %s1611_s15  ;;  %s2317_s14 = smov %s2320_s19 }
 0x274   : > { %s2318_s15 = smov %s2324_s20  ;;  %14 = sbr.rel (!%p12_p5) target bundleno = 5 (0x5), region = 64 }
 0x279   :  { %1344 = vsyncpa [#allocation3], 1 }
 0x27a   :  { %1346 = vsyncpa [#allocation3 + $0x1], 1 }

</bundles_post_ra>
